<compile_context>
chip_gen: v6e
topology: v6e:2x2x1
jax: 0.10.0
libtpu: 0.0.40
codegen_flags: <defaults>
</compile_context>

<pallas_src>
import jax
import jax.numpy as jnp
from jax.experimental import pallas as pl
from jax.experimental.pallas import tpu as pltpu


def mlp_kernel(x_ref, w1_ref, b1_ref, w2_ref, b2_ref, o_ref):
    # Layer 1: h = x @ W1 + b1. Weights were pre-transposed in the wrapper, so
    # this is the canonical k-major contraction (no per-tile XLU transpose).
    x = x_ref[...].astype(w1_ref.dtype)                      # in-kernel cast, no HBM trip
    h = jnp.dot(x, w1_ref[...], preferred_element_type=jnp.float32)   # (tb, H), f32 acc
    h = jnp.maximum(h + b1_ref[...], 0.0)                    # bias + ReLU in f32 on the VPU

    # Layer 2: logits = h @ W2 + b2 over the lane-dense padded class dim (C_pad).
    out = jnp.dot(h.astype(w2_ref.dtype), w2_ref[...],
                  preferred_element_type=jnp.float32)         # (tb, C_pad), f32 acc
    o_ref[...] = (out + b2_ref[...]).astype(o_ref.dtype)      # dense, unmasked stores


def _round_up(v, m):
    return (v + m - 1) // m * m


def neural_net_forward(x, w1, b1, w2, b2, *, compute_dtype=None, max_block_b=512,
                       vmem_budget_bytes=48 * 1024 * 1024):
    """PyTorch parameter layouts: x (B, In); w1 (H, In); b1 (H,); w2 (C, H); b2 (C,).
    compute_dtype=jnp.bfloat16 runs the matmuls with bf16 inputs (MXU-native on
    v6e/v7x) while accumulation / bias / ReLU stay f32."""
    B, In = x.shape
    H = w1.shape[0]
    C = w2.shape[0]
    out_dtype = x.dtype
    w_dtype = compute_dtype if compute_dtype is not None else w1.dtype

    # --- One-time weight/bias prep (layout plumbing, not per-tile compute) ----
    # TODO(synk): in a real model cache these transposed/padded (and bf16-cast)
    # parameters across forward calls instead of rebuilding them every call.
    C_pad = max(128, _round_up(C, 128))                       # lane-dense output width
    w1_t = w1.T.astype(w_dtype)                               # (In, H)
    w2_tp = jnp.zeros((H, C_pad), w_dtype).at[:, :C].set(w2.T.astype(w_dtype))  # (H, C_pad)
    b1_r = b1.astype(jnp.float32).reshape(1, H)
    b2_p = jnp.zeros((1, C_pad), jnp.float32).at[0, :C].set(b2.astype(jnp.float32))
    # NOTE: x is NOT cast here — any bf16 cast happens in-kernel on the VMEM tile.

    # --- Batch tile derivation against the VMEM budget (v7x: 64 MiB physical) --
    x_bytes = jnp.dtype(x.dtype).itemsize
    w_bytes = jnp.dtype(w_dtype).itemsize
    o_bytes = jnp.dtype(out_dtype).itemsize
    resident = (In * H + H * C_pad) * w_bytes + (H + C_pad) * 4        # single-buffered
    per_row = 2 * In * x_bytes + 2 * C_pad * o_bytes + H * 4           # 2x x, 2x out, f32 h
    tb_cap = max(8, (vmem_budget_bytes - resident) // per_row)
    tb = int(min(B, max_block_b, tb_cap))
    if tb >= 128:
        tb = tb // 128 * 128              # 128-aligned M tiles: full MXU passes (v5e)
    elif B > tb:
        tb = max(8, tb // 8 * 8)
    else:
        tb = B                            # full batch is always a legal block
    nb = pl.cdiv(B, tb)
    if nb > 1 and nb % 2:                 # even tile count -> balanced v7x megacore split
        nb += 1
        tb = max(8, _round_up(pl.cdiv(B, nb), 8))
        nb = pl.cdiv(B, tb)

    vmem = pltpu.MemorySpace.VMEM
    cost = pl.CostEstimate(
        flops=2 * B * (In * H + H * C_pad),
        transcendentals=0,
        bytes_accessed=int(x.size * x_bytes
                           + (w1_t.size + w2_tp.size) * w_bytes
                           + (b1_r.size + b2_p.size) * 4
                           + B * C_pad * o_bytes))

    def call(single_buffer_weights):
        # Pinned blocks (constant index map) don't need the default second
        # pipeline buffer; Buffered(1) halves their resident VMEM footprint.
        pm = pl.Buffered(1) if single_buffer_weights else None

        def pinned(shape):
            return pl.BlockSpec(shape, lambda i: (0, 0), memory_space=vmem,
                                pipeline_mode=pm)

        return pl.pallas_call(
            mlp_kernel,
            out_shape=jax.ShapeDtypeStruct((B, C_pad), out_dtype),
            grid=(nb,),
            in_specs=[
                pl.BlockSpec((tb, In), lambda i: (i, 0), memory_space=vmem),  # x tiles
                pinned((In, H)),        # W1 (K, N) — VMEM resident
                pinned((1, H)),         # b1
                pinned((H, C_pad)),     # W2 (K, N_pad) — VMEM resident, lane-dense
                pinned((1, C_pad)),     # b2 padded
            ],
            out_specs=pl.BlockSpec((tb, C_pad), lambda i: (i, 0), memory_space=vmem),
            compiler_params=pltpu.CompilerParams(
                dimension_semantics=("parallel",),
                vmem_limit_bytes=vmem_budget_bytes),
            cost_estimate=cost,
        )(x, w1_t, b1_r, w2_tp, b2_p)

    try:
        out_padded = call(single_buffer_weights=True)
    except Exception:
        # Fallback for JAX/Mosaic versions that reject pipeline_mode=Buffered(1);
        # identical math, just double-buffered (tiny) weights.
        out_padded = call(single_buffer_weights=False)

    return out_padded[:, :C]              # drop the lane-padding outside the kernel


if __name__ == "__main__":
    # Shapes consistent with NeuralNet(input_size, hidden_size, num_classes).
    batch_size = 8
    input_size = 64
    hidden_size = 32
    num_classes = 10

    key = jax.random.PRNGKey(0)
    kx, kw1, kb1, kw2, kb2 = jax.random.split(key, 5)

    x = jax.random.normal(kx, (batch_size, input_size), dtype=jnp.float32)

    # nn.Linear-style uniform(-1/sqrt(fan_in), +1/sqrt(fan_in)) init, PyTorch layouts.
    bound1 = 1.0 / jnp.sqrt(input_size)
    w1 = jax.random.uniform(kw1, (hidden_size, input_size), jnp.float32,
                            minval=-bound1, maxval=bound1)
    b1 = jax.random.uniform(kb1, (hidden_size,), jnp.float32,
                            minval=-bound1, maxval=bound1)
    bound2 = 1.0 / jnp.sqrt(hidden_size)
    w2 = jax.random.uniform(kw2, (num_classes, hidden_size), jnp.float32,
                            minval=-bound2, maxval=bound2)
    b2 = jax.random.uniform(kb2, (num_classes,), jnp.float32,
                            minval=-bound2, maxval=bound2)

    # Reference (same math as the PyTorch forward).
    ref = jnp.maximum(x @ w1.T + b1, 0.0) @ w2.T + b2

    # f32 path: tight tolerance.
    out_f32 = jax.block_until_ready(neural_net_forward(x, w1, b1, w2, b2))
    assert out_f32.shape == (batch_size, num_classes)
    assert jnp.allclose(out_f32, ref, atol=1e-5, rtol=1e-5)

    # bf16 matmul-input path (in-kernel x cast, f32 accumulation): looser tolerance.
    out_bf16 = jax.block_until_ready(
        neural_net_forward(x, w1, b1, w2, b2, compute_dtype=jnp.bfloat16))
    assert out_bf16.shape == (batch_size, num_classes)
    assert jnp.allclose(out_bf16, ref, atol=5e-2, rtol=5e-2)

    print("KERNEL_OK")
</pallas_src>

<mosaic_0001>
module attributes {stable_mosaic.version = 11 : i64} {
  func.func @mlp_kernel(%arg0: i32, %arg1: memref<8x64xf32, #tpu.memory_space<vmem>>, %arg2: memref<64x32xf32, #tpu.memory_space<vmem>>, %arg3: memref<1x32xf32, #tpu.memory_space<vmem>>, %arg4: memref<32x128xf32, #tpu.memory_space<vmem>>, %arg5: memref<1x128xf32, #tpu.memory_space<vmem>>, %arg6: memref<8x128xf32, #tpu.memory_space<vmem>>) attributes {dimension_semantics = [#tpu.dimension_semantics<parallel>], iteration_bounds = array<i64: 1>, scalar_prefetch = 0 : i64, scratch_operands = 0 : i64, tpu.core_type = #tpu.core_type<tc>, window_params = [{transform_indices = @transform_0, window_bounds = array<i64: 8, 64>}, {pipeline_mode = #tpu.pipeline_mode<synchronous>, transform_indices = @transform_1, window_bounds = array<i64: 64, 32>}, {pipeline_mode = #tpu.pipeline_mode<synchronous>, transform_indices = @transform_2, window_bounds = array<i64: 1, 32>}, {pipeline_mode = #tpu.pipeline_mode<synchronous>, transform_indices = @transform_3, window_bounds = array<i64: 32, 128>}, {pipeline_mode = #tpu.pipeline_mode<synchronous>, transform_indices = @transform_4, window_bounds = array<i64: 1, 128>}, {transform_indices = @transform_5, window_bounds = array<i64: 8, 128>}]} {
    %c0 = arith.constant 0 : index
    %c0_0 = arith.constant 0 : index
    %0 = vector.load %arg1[%c0, %c0_0] : memref<8x64xf32, #tpu.memory_space<vmem>>, vector<8x64xf32>
    %c0_1 = arith.constant 0 : index
    %c0_2 = arith.constant 0 : index
    %1 = vector.load %arg2[%c0_1, %c0_2] : memref<64x32xf32, #tpu.memory_space<vmem>>, vector<64x32xf32>
    %cst = arith.constant dense<0.000000e+00> : vector<8x32xf32>
    %2 = tpu.matmul %0, %1, %cst {dimension_numbers = #tpu.dot_dimension_numbers<[1], [0], [0], [1], [0, 0, 1, 1], [], []>} : vector<8x64xf32>, vector<64x32xf32>, vector<8x32xf32> -> vector<8x32xf32>
    %c0_3 = arith.constant 0 : index
    %c0_4 = arith.constant 0 : index
    %3 = vector.load %arg3[%c0_3, %c0_4] : memref<1x32xf32, #tpu.memory_space<vmem>>, vector<1x32xf32>
    %4 = vector.broadcast %3 : vector<1x32xf32> to vector<8x32xf32>
    %5 = arith.addf %2, %4 : vector<8x32xf32>
    %cst_5 = arith.constant 0.000000e+00 : f32
    %6 = vector.broadcast %cst_5 : f32 to vector<8x32xf32>
    %7 = arith.maximumf %5, %6 : vector<8x32xf32>
    %c0_6 = arith.constant 0 : index
    %c0_7 = arith.constant 0 : index
    %8 = vector.load %arg4[%c0_6, %c0_7] : memref<32x128xf32, #tpu.memory_space<vmem>>, vector<32x128xf32>
    %cst_8 = arith.constant dense<0.000000e+00> : vector<8x128xf32>
    %9 = tpu.matmul %7, %8, %cst_8 {dimension_numbers = #tpu.dot_dimension_numbers<[1], [0], [0], [1], [0, 0, 1, 1], [], []>} : vector<8x32xf32>, vector<32x128xf32>, vector<8x128xf32> -> vector<8x128xf32>
    %c0_9 = arith.constant 0 : index
    %c0_10 = arith.constant 0 : index
    %10 = vector.load %arg5[%c0_9, %c0_10] : memref<1x128xf32, #tpu.memory_space<vmem>>, vector<1x128xf32>
    %11 = vector.broadcast %10 : vector<1x128xf32> to vector<8x128xf32>
    %12 = arith.addf %9, %11 : vector<8x128xf32>
    %c0_11 = arith.constant 0 : index
    %c0_12 = arith.constant 0 : index
    %13 = vector.load %arg6[%c0_11, %c0_12] : memref<8x128xf32, #tpu.memory_space<vmem>>, vector<8x128xf32>
    tpu.vector_store %arg6[%c0_11, %c0_12], %12 {strides = array<i32>} : memref<8x128xf32, #tpu.memory_space<vmem>>, vector<8x128xf32>,
    return
  }
  func.func @transform_0(%arg0: i32) -> (i32, i32) {
    %c0_i32 = arith.constant 0 : i32
    %c0_i32_0 = arith.constant 0 : i32
    return %arg0, %c0_i32 : i32, i32
  }
  func.func @transform_1(%arg0: i32) -> (i32, i32) {
    %c0_i32 = arith.constant 0 : i32
    %c0_i32_0 = arith.constant 0 : i32
    %c0_i32_1 = arith.constant 0 : i32
    return %c0_i32, %c0_i32_0 : i32, i32
  }
  func.func @transform_2(%arg0: i32) -> (i32, i32) {
    %c0_i32 = arith.constant 0 : i32
    %c0_i32_0 = arith.constant 0 : i32
    %c0_i32_1 = arith.constant 0 : i32
    return %c0_i32, %c0_i32_0 : i32, i32
  }
  func.func @transform_3(%arg0: i32) -> (i32, i32) {
    %c0_i32 = arith.constant 0 : i32
    %c0_i32_0 = arith.constant 0 : i32
    %c0_i32_1 = arith.constant 0 : i32
    return %c0_i32, %c0_i32_0 : i32, i32
  }
  func.func @transform_4(%arg0: i32) -> (i32, i32) {
    %c0_i32 = arith.constant 0 : i32
    %c0_i32_0 = arith.constant 0 : i32
    %c0_i32_1 = arith.constant 0 : i32
    return %c0_i32, %c0_i32_0 : i32, i32
  }
  func.func @transform_5(%arg0: i32) -> (i32, i32) {
    %c0_i32 = arith.constant 0 : i32
    %c0_i32_0 = arith.constant 0 : i32
    return %arg0, %c0_i32 : i32, i32
  }
}

module attributes {stable_mosaic.version = 11 : i64} {
  func.func @mlp_kernel(%arg0: i32, %arg1: memref<8x64xf32, #tpu.memory_space<vmem>>, %arg2: memref<64x32xf32, #tpu.memory_space<vmem>>, %arg3: memref<1x32xf32, #tpu.memory_space<vmem>>, %arg4: memref<32x128xf32, #tpu.memory_space<vmem>>, %arg5: memref<1x128xf32, #tpu.memory_space<vmem>>, %arg6: memref<8x128xf32, #tpu.memory_space<vmem>>) attributes {dimension_semantics = [#tpu.dimension_semantics<parallel>], iteration_bounds = array<i64: 1>, scalar_prefetch = 0 : i64, scratch_operands = 0 : i64, tpu.core_type = #tpu.core_type<tc>, window_params = [{transform_indices = @transform_0, window_bounds = array<i64: 8, 64>}, {pipeline_mode = #tpu.pipeline_mode<synchronous>, transform_indices = @transform_1, window_bounds = array<i64: 64, 32>}, {pipeline_mode = #tpu.pipeline_mode<synchronous>, transform_indices = @transform_2, window_bounds = array<i64: 1, 32>}, {pipeline_mode = #tpu.pipeline_mode<synchronous>, transform_indices = @transform_3, window_bounds = array<i64: 32, 128>}, {pipeline_mode = #tpu.pipeline_mode<synchronous>, transform_indices = @transform_4, window_bounds = array<i64: 1, 128>}, {transform_indices = @transform_5, window_bounds = array<i64: 8, 128>}]} {
    %c0 = arith.constant 0 : index
    %c0_0 = arith.constant 0 : index
    %0 = vector.load %arg1[%c0, %c0_0] : memref<8x64xf32, #tpu.memory_space<vmem>>, vector<8x64xf32>
    %c0_1 = arith.constant 0 : index
    %c0_2 = arith.constant 0 : index
    %1 = vector.load %arg2[%c0_1, %c0_2] : memref<64x32xf32, #tpu.memory_space<vmem>>, vector<64x32xf32>
    %cst = arith.constant dense<0.000000e+00> : vector<8x32xf32>
    %2 = tpu.matmul %0, %1, %cst {dimension_numbers = #tpu.dot_dimension_numbers<[1], [0], [0], [1], [0, 0, 1, 1], [], []>} : vector<8x64xf32>, vector<64x32xf32>, vector<8x32xf32> -> vector<8x32xf32>
    %c0_3 = arith.constant 0 : index
    %c0_4 = arith.constant 0 : index
    %3 = vector.load %arg3[%c0_3, %c0_4] : memref<1x32xf32, #tpu.memory_space<vmem>>, vector<1x32xf32>
    %4 = vector.broadcast %3 : vector<1x32xf32> to vector<8x32xf32>
    %5 = arith.addf %2, %4 : vector<8x32xf32>
    %cst_5 = arith.constant 0.000000e+00 : f32
    %6 = vector.broadcast %cst_5 : f32 to vector<8x32xf32>
    %7 = arith.maximumf %5, %6 : vector<8x32xf32>
    %c0_6 = arith.constant 0 : index
    %c0_7 = arith.constant 0 : index
    %8 = vector.load %arg4[%c0_6, %c0_7] : memref<32x128xf32, #tpu.memory_space<vmem>>, vector<32x128xf32>
    %cst_8 = arith.constant dense<0.000000e+00> : vector<8x128xf32>
    %9 = tpu.matmul %7, %8, %cst_8 {dimension_numbers = #tpu.dot_dimension_numbers<[1], [0], [0], [1], [0, 0, 1, 1], [], []>} : vector<8x32xf32>, vector<32x128xf32>, vector<8x128xf32> -> vector<8x128xf32>
    %c0_9 = arith.constant 0 : index
    %c0_10 = arith.constant 0 : index
    %10 = vector.load %arg5[%c0_9, %c0_10] : memref<1x128xf32, #tpu.memory_space<vmem>>, vector<1x128xf32>
    %11 = vector.broadcast %10 : vector<1x128xf32> to vector<8x128xf32>
    %12 = arith.addf %9, %11 : vector<8x128xf32>
    %c0_11 = arith.constant 0 : index
    %c0_12 = arith.constant 0 : index
    %13 = vector.load %arg6[%c0_11, %c0_12] : memref<8x128xf32, #tpu.memory_space<vmem>>, vector<8x128xf32>
    tpu.vector_store %arg6[%c0_11, %c0_12], %12 {strides = array<i32>} : memref<8x128xf32, #tpu.memory_space<vmem>>, vector<8x128xf32>,
    return
  }
  func.func @transform_0(%arg0: i32) -> (i32, i32) {
    %c0_i32 = arith.constant 0 : i32
    %c0_i32_0 = arith.constant 0 : i32
    return %arg0, %c0_i32 : i32, i32
  }
  func.func @transform_1(%arg0: i32) -> (i32, i32) {
    %c0_i32 = arith.constant 0 : i32
    %c0_i32_0 = arith.constant 0 : i32
    %c0_i32_1 = arith.constant 0 : i32
    return %c0_i32, %c0_i32_0 : i32, i32
  }
  func.func @transform_2(%arg0: i32) -> (i32, i32) {
    %c0_i32 = arith.constant 0 : i32
    %c0_i32_0 = arith.constant 0 : i32
    %c0_i32_1 = arith.constant 0 : i32
    return %c0_i32, %c0_i32_0 : i32, i32
  }
  func.func @transform_3(%arg0: i32) -> (i32, i32) {
    %c0_i32 = arith.constant 0 : i32
    %c0_i32_0 = arith.constant 0 : i32
    %c0_i32_1 = arith.constant 0 : i32
    return %c0_i32, %c0_i32_0 : i32, i32
  }
  func.func @transform_4(%arg0: i32) -> (i32, i32) {
    %c0_i32 = arith.constant 0 : i32
    %c0_i32_0 = arith.constant 0 : i32
    %c0_i32_1 = arith.constant 0 : i32
    return %c0_i32, %c0_i32_0 : i32, i32
  }
  func.func @transform_5(%arg0: i32) -> (i32, i32) {
    %c0_i32 = arith.constant 0 : i32
    %c0_i32_0 = arith.constant 0 : i32
    return %arg0, %c0_i32 : i32, i32
  }
}

</mosaic_0001>

<bundles_post_ra>
// kernel: tpu_custom_call.1
= control target key start
LH: loop header
LB: loop body
LE: loop exit
PB: predicated region body
PF: predicated region fallthrough
CT: control target
= control target key end

     0   :  { %v285_v1 = vmov 0.0   ;;  %vm286_vm0 = vmmov 0   ;;  %s366_s0 = inlined_call_operand.vmem [shape: f32[8,64], index: 0, kind: input, shape index: {}]   ;;  %s367_s1 = inlined_call_operand.vmem [shape: f32[64,32], index: 1, kind: input, shape index: {}]   ;;  %s368_s2 = inlined_call_operand.vmem [shape: f32[1,32], index: 2, kind: input, shape index: {}]   ;;  %s369_s3 = inlined_call_operand.vmem [shape: f32[32,128], index: 3, kind: input, shape index: {}]   ;;  %s370_s4 = inlined_call_operand.vmem [shape: f32[1,128], index: 4, kind: input, shape index: {}]   ;;  %s371_s5 = inlined_call_operand.hbm [shape: f32[8,128], index: 5, kind: output, shape index: {}]  }
   0x1   :  { %v29_v0 = vld [vmem:[%s367_s1 + $0x38] sm:$0xff]  ;;  %230 = vmatprep.subr.mxu0 %v285_v1  ;;  %v28_v2 = vld [vmem:[%s367_s1 + $0x30] sm:$0xff]  ;;  %246 = vmatprep.mubr.msk.f32.mxu0 %vm286_vm0, %v285_v1  ;;  %v27_v3 = vld [vmem:[%s367_s1 + $0x28] sm:$0xff] }
   0x2   :  { %231 = vmatpush3.msra.mxu0 %v29_v0  ;;  %249 = vmatprep.subr.mxu1 %v285_v1  ;;  %v115_v4 = vld [vmem:[%s369_s3 + $0x18] sm:$0xff] }
   0x3   :  { %232 = vmatprep.subr.mxu0 %v285_v1  ;;  %257 = vmatprep.mubr.msk.f32.mxu1 %vm286_vm0, %v285_v1 }
   0x4   :  { %10 = vsyncpa [#allocation3], 0  ;;  %233 = vmatpush3.msra.mxu0 %v28_v2  ;;  %250 = vmatpush3.msra.mxu1 %v115_v4  ;;  %v26_v5 = vld [vmem:[%s367_s1 + $0x20] sm:$0xff]  ;;  %v25_v6 = vld [vmem:[%s367_s1 + $0x18] sm:$0xff]  ;;  %vm37_vm1 = vcmask 523264   ;;  %vm123_vm2 = vcmask 261120  }
   0x5   :  { %234 = vmatprep.subr.mxu0 %v285_v1  ;;  %251 = vmatprep.subr.mxu1 %v285_v1  ;;  %v24_v7 = vld [vmem:[%s367_s1 + $0x10] sm:$0xff]  ;;  %v23_v8 = vld [vmem:[%s367_s1 + $0x8] sm:$0xff]  ;;  %v22_v9 = vld [vmem:[%s367_s1] sm:$0xff]  ;;  %s287_s21 = smov [#allocation2]  }
   0x6   :  { %235 = vmatpush3.msra.mxu0 %v27_v3  ;;  %v21_v10 = vld [vmem:[%s366_s0] sm:$0xff]  ;;  %v114_v11 = vld [vmem:[%s369_s3 + $0x10] sm:$0xff]  ;;  %v113_v12 = vld [vmem:[%s369_s3 + $0x8] sm:$0xff]  ;;  %s204_s22 = sshll.u32 %s287_s21, 4  ;;  %s205_s22 = int_to_ptr.vmem [resolvable:$true] %s204_s22 }
   0x7   :  { %236 = vmatprep.subr.mxu0 %v285_v1  ;;  %252 = vmatpush3.msra.mxu1 %v114_v11  ;;  %v112_v13 = vld [vmem:[%s369_s3] sm:$0xff]  ;;  %s263_s3 = scalar_lea.vmem %s205_s22, 128  ;;  %p268_p1 = scmp.lt.s32.totalorder %s205_s22, %s205_s22 }
   0x8   :  { %237 = vmatpush3.msra.mxu0 %v26_v5  ;;  %253 = vmatprep.subr.mxu1 %v285_v1  ;;  %v212_v14 = vld [vmem:[%s368_s2] ss:$0 sm:$0xff]  ;;  %p264_p0 = scmp.ne.s32.totalorder %s205_s22, %s263_s3  ;;  %p269_p2 = scmp.lt.s32.totalorder %s263_s3, %s263_s3 }
   0x9   :  { %238 = vmatprep.subr.mxu0 %v285_v1  ;;  %254 = vmatpush3.msra.mxu1 %v113_v12  ;;  %v214_v19 = vld [vmem:[%s370_s4] ss:$0 sm:$0xff] }
   0xa   :  { %239 = vmatpush3.msra.mxu0 %v25_v6  ;;  %255 = vmatprep.subr.mxu1 %v285_v1  ;;  %p270_p3 = por %p269_p2, %p268_p1 }
   0xb   :  { %240 = vmatprep.subr.mxu0 %v285_v1  ;;  %256 = vmatpush3.msra.mxu1 %v112_v13 }
   0xc   :  { %241 = vmatpush3.msra.mxu0 %v24_v7  ;;  %p271_p4 = pnand %p270_p3, %p264_p0 }
   0xd   :  { %242 = vmatprep.subr.mxu0 %v285_v1 }
   0xe   :  { %243 = vmatpush3.msra.mxu0 %v23_v8 }
   0xf   :  { %244 = vmatprep.subr.mxu0 %v285_v1 }
  0x10   :  { %245 = vmatpush3.msra.mxu0 %v22_v9 }
  0x11   :  { %247 = vmatmul.mubr.msk.f32.vlgmr.msra.gmra.mxu0 %vm37_vm1, %v21_v10 }
  0xd1   :  { %v107_v15 = vpop.f32.mrf.mxu0 }
  0xd2   :  { %v108_v16 = vadd.f32 %v212_v14, %v107_v15 }
  0xd3   :  { %v248_v17 = vpop.f32.mrf.mxu0 }
  0xd4   :  { %v111_v18 = vmax.f32 %v108_v16, 0.0 }
  0xd6   :  { %258 = vmatmul.mubr.msk.f32.vlgmr.msra.gmra.mxu1 %vm123_vm2, %v111_v18 }
 0x196   :  { %v193_v20 = vpop.f32.mrf.mxu1 }
 0x197   :  { %v194_v21 = vadd.f32 %v214_v19, %v193_v20 }
 0x198   :  { %v259_v22 = vpop.f32.mrf.mxu1 }
 0x199   :  { %197 = vst [vmem:[#allocation2] sm:$0xff] %v194_v21 }
 0x19a   :  { %274 = shalt.err (!%p271_p4)
}
 0x19b   :  { %207 = dma.vmem_to_hbm [thread:$0]  %s205_s22, 128, %s371_s5, [#allocation3]  }
 0x19c   :  { %283 = dma.done.wait [#allocation3], 128  }
 0x19d   :  { %284 = vsyncadd [#allocation3], 4294967168 }
 0x19e   :  { %211 = vsyncpa [#allocation3], 1 }

// kernel: tpu_custom_call.1
= control target key start
LH: loop header
LB: loop body
LE: loop exit
PB: predicated region body
PF: predicated region fallthrough
CT: control target
= control target key end

     0   :  { %v285_v1 = vmov 0.0   ;;  %vm286_vm0 = vmmov 0   ;;  %s366_s0 = inlined_call_operand.vmem [shape: f32[8,64], index: 0, kind: input, shape index: {}]   ;;  %s367_s1 = inlined_call_operand.vmem [shape: f32[64,32], index: 1, kind: input, shape index: {}]   ;;  %s368_s2 = inlined_call_operand.vmem [shape: f32[1,32], index: 2, kind: input, shape index: {}]   ;;  %s369_s3 = inlined_call_operand.vmem [shape: f32[32,128], index: 3, kind: input, shape index: {}]   ;;  %s370_s4 = inlined_call_operand.vmem [shape: f32[1,128], index: 4, kind: input, shape index: {}]   ;;  %s371_s5 = inlined_call_operand.hbm [shape: f32[8,128], index: 5, kind: output, shape index: {}]  }
   0x1   :  { %v29_v0 = vld [vmem:[%s367_s1 + $0x38] sm:$0xff]  ;;  %230 = vmatprep.subr.mxu0 %v285_v1  ;;  %v28_v2 = vld [vmem:[%s367_s1 + $0x30] sm:$0xff]  ;;  %246 = vmatprep.mubr.msk.f32.mxu0 %vm286_vm0, %v285_v1  ;;  %v27_v3 = vld [vmem:[%s367_s1 + $0x28] sm:$0xff] }
   0x2   :  { %231 = vmatpush3.msra.mxu0 %v29_v0  ;;  %249 = vmatprep.subr.mxu1 %v285_v1  ;;  %v115_v4 = vld [vmem:[%s369_s3 + $0x18] sm:$0xff] }
   0x3   :  { %232 = vmatprep.subr.mxu0 %v285_v1  ;;  %257 = vmatprep.mubr.msk.f32.mxu1 %vm286_vm0, %v285_v1 }
   0x4   :  { %10 = vsyncpa [#allocation3], 0  ;;  %233 = vmatpush3.msra.mxu0 %v28_v2  ;;  %250 = vmatpush3.msra.mxu1 %v115_v4  ;;  %v26_v5 = vld [vmem:[%s367_s1 + $0x20] sm:$0xff]  ;;  %v25_v6 = vld [vmem:[%s367_s1 + $0x18] sm:$0xff]  ;;  %vm37_vm1 = vcmask 523264   ;;  %vm123_vm2 = vcmask 261120  }
   0x5   :  { %234 = vmatprep.subr.mxu0 %v285_v1  ;;  %251 = vmatprep.subr.mxu1 %v285_v1  ;;  %v24_v7 = vld [vmem:[%s367_s1 + $0x10] sm:$0xff]  ;;  %v23_v8 = vld [vmem:[%s367_s1 + $0x8] sm:$0xff]  ;;  %v22_v9 = vld [vmem:[%s367_s1] sm:$0xff]  ;;  %s287_s21 = smov [#allocation2]  }
   0x6   :  { %235 = vmatpush3.msra.mxu0 %v27_v3  ;;  %v21_v10 = vld [vmem:[%s366_s0] sm:$0xff]  ;;  %v114_v11 = vld [vmem:[%s369_s3 + $0x10] sm:$0xff]  ;;  %v113_v12 = vld [vmem:[%s369_s3 + $0x8] sm:$0xff]  ;;  %s204_s22 = sshll.u32 %s287_s21, 4  ;;  %s205_s22 = int_to_ptr.vmem [resolvable:$true] %s204_s22 }
   0x7   :  { %236 = vmatprep.subr.mxu0 %v285_v1  ;;  %252 = vmatpush3.msra.mxu1 %v114_v11  ;;  %v112_v13 = vld [vmem:[%s369_s3] sm:$0xff]  ;;  %s263_s3 = scalar_lea.vmem %s205_s22, 128  ;;  %p268_p1 = scmp.lt.s32.totalorder %s205_s22, %s205_s22 }
   0x8   :  { %237 = vmatpush3.msra.mxu0 %v26_v5  ;;  %253 = vmatprep.subr.mxu1 %v285_v1  ;;  %v212_v14 = vld [vmem:[%s368_s2] ss:$0 sm:$0xff]  ;;  %p264_p0 = scmp.ne.s32.totalorder %s205_s22, %s263_s3  ;;  %p269_p2 = scmp.lt.s32.totalorder %s263_s3, %s263_s3 }
   0x9   :  { %238 = vmatprep.subr.mxu0 %v285_v1  ;;  %254 = vmatpush3.msra.mxu1 %v113_v12  ;;  %v214_v19 = vld [vmem:[%s370_s4] ss:$0 sm:$0xff] }
   0xa   :  { %239 = vmatpush3.msra.mxu0 %v25_v6  ;;  %255 = vmatprep.subr.mxu1 %v285_v1  ;;  %p270_p3 = por %p269_p2, %p268_p1 }
   0xb   :  { %240 = vmatprep.subr.mxu0 %v285_v1  ;;  %256 = vmatpush3.msra.mxu1 %v112_v13 }
   0xc   :  { %241 = vmatpush3.msra.mxu0 %v24_v7  ;;  %p271_p4 = pnand %p270_p3, %p264_p0 }
   0xd   :  { %242 = vmatprep.subr.mxu0 %v285_v1 }
   0xe   :  { %243 = vmatpush3.msra.mxu0 %v23_v8 }
   0xf   :  { %244 = vmatprep.subr.mxu0 %v285_v1 }
  0x10   :  { %245 = vmatpush3.msra.mxu0 %v22_v9 }
  0x11   :  { %247 = vmatmul.mubr.msk.f32.vlgmr.msra.gmra.mxu0 %vm37_vm1, %v21_v10 }
  0xd1   :  { %v107_v15 = vpop.f32.mrf.mxu0 }
  0xd2   :  { %v108_v16 = vadd.f32 %v212_v14, %v107_v15 }
  0xd3   :  { %v248_v17 = vpop.f32.mrf.mxu0 }
  0xd4   :  { %v111_v18 = vmax.f32 %v108_v16, 0.0 }
  0xd6   :  { %258 = vmatmul.mubr.msk.f32.vlgmr.msra.gmra.mxu1 %vm123_vm2, %v111_v18 }
 0x196   :  { %v193_v20 = vpop.f32.mrf.mxu1 }
 0x197   :  { %v194_v21 = vadd.f32 %v214_v19, %v193_v20 }
 0x198   :  { %v259_v22 = vpop.f32.mrf.mxu1 }
 0x199   :  { %197 = vst [vmem:[#allocation2] sm:$0xff] %v194_v21 }
 0x19a   :  { %274 = shalt.err (!%p271_p4)
}
 0x19b   :  { %207 = dma.vmem_to_hbm [thread:$0]  %s205_s22, 128, %s371_s5, [#allocation3]  }
 0x19c   :  { %283 = dma.done.wait [#allocation3], 128  }
 0x19d   :  { %284 = vsyncadd [#allocation3], 4294967168 }
 0x19e   :  { %211 = vsyncpa [#allocation3], 1 }

</bundles_post_ra>
